<compile_context>
chip_gen: v7x
topology: tpu7x:2x2x1
jax: 0.10.0
libtpu: 0.0.40
codegen_flags: <defaults>
</compile_context>

<pallas_src>
import functools

import jax
import jax.numpy as jnp
from jax import lax
from jax.experimental import pallas as pl
from jax.experimental.pallas import tpu as pltpu


def skip_conv1d_kernel(x_ref, w_ref, b_ref, *rest, k, pad, l_tile):
    # x_ref : (1, C_in, TL)          main L-tile of the input (NCL layout)
    # w_ref : (k, C_out, C_in)       conv taps, 1x1 skip folded into tap `pad`
    # b_ref : (C_out, 1)             conv bias
    # hl/hr : (1, 1, C_in, pad)      left/right halo columns (only when pad>0)
    # o_ref : (1, C_out, TL)         lane-dense output tile
    # win   : (C_in, TL + 2*pad)     VMEM scratch [left halo | main | right halo]
    if pad > 0:
        hl_ref, hr_ref, o_ref, win_ref = rest
    else:
        (o_ref,) = rest

    # Center tap straight from the lane-aligned input tile; bias folded into
    # the accumulator via broadcasting ((C_out, TL) + (C_out, 1)).
    acc = jnp.dot(w_ref[pad], x_ref[0],
                  preferred_element_type=jnp.float32) + b_ref[...]

    if pad > 0:
        # Assemble the halo window in VMEM scratch (Ref stores, no big value
        # slab); each shifted tap is a static slice of that window.
        win_ref[:, pad:pad + l_tile] = x_ref[0]
        win_ref[:, :pad] = hl_ref[0, 0]
        win_ref[:, pad + l_tile:pad + l_tile + pad] = hr_ref[0, 0]
        for t in range(k):
            if t == pad:
                continue
            acc = acc + jnp.dot(w_ref[t], win_ref[:, t:t + l_tile],
                                preferred_element_type=jnp.float32)

    o_ref[0] = acc.astype(o_ref.dtype)


def _pick_l_tile(L, C_in, C_out, pad, itemsize):
    """Largest lane-aligned L tile keeping double-buffered in+out traffic per
    grid step around ~6 MiB (>=512 lanes whenever possible -> ~85%+ of the HBM
    roofline; comfortably inside v7x's 64 MiB VMEM with headroom)."""
    if L % 128 != 0:
        return L                    # short / irregular length: single tile
    budget = 6 * 1024 * 1024
    per_col = 2 * (C_in + C_out) * itemsize
    tl = min(L, max(128, (budget // per_col) // 128 * 128))
    while L % tl:
        tl -= 128
    if tl < pad:
        return L
    return tl


def skip_conv1d(x, w_conv, w_skip, bias, *, padding, l_tile=None):
    """x: (N, C_in, L) NCL; w_conv: (C_out, C_in, k) PyTorch layout;
    w_skip: (C_out, C_in, 1); bias: (C_out,). Returns (N, C_out, L) NCL."""
    N, C_in, L = x.shape
    C_out, _, k = w_conv.shape
    pad = padding
    assert 2 * pad == k - 1, (
        "SkipConv1d forward only type-checks when the conv preserves length "
        "(stride=1, dilation=1, padding=(k-1)//2)")

    if l_tile is None:
        l_tile = _pick_l_tile(L, C_in, C_out, pad, jnp.dtype(x.dtype).itemsize)
    assert L % l_tile == 0
    assert pad <= l_tile
    n_lt = L // l_tile

    # Weight prep (tiny): fold the 1x1 skip into the center tap. For stride=1
    # the skip branch reads x[:, :, i], which is exactly conv tap t == pad.
    wc = jnp.transpose(w_conv, (2, 0, 1))                 # (k, C_out, C_in)
    wc = wc.at[pad].add(w_skip[:, :, 0])
    b = bias.reshape(C_out, 1)

    # Tiny halo tensors: left/right `pad` columns of each L-tile (zeros at the
    # sequence boundary), built from a reshape view so only 2*pad*n_lt columns
    # of x are touched in the wrapper.
    dt = x.dtype
    if pad > 0:
        zero = jnp.zeros((N, 1, C_in, pad), dt)
        if n_lt == 1:
            hl = zero
            hr = zero
        else:
            x_r = x.reshape(N, C_in, n_lt, l_tile)
            lefts = jnp.transpose(x_r[:, :, :n_lt - 1, l_tile - pad:],
                                  (0, 2, 1, 3))           # (N, n_lt-1, C_in, pad)
            rights = jnp.transpose(x_r[:, :, 1:, :pad], (0, 2, 1, 3))
            hl = jnp.concatenate([zero, lefts], axis=1)   # (N, n_lt, C_in, pad)
            hr = jnp.concatenate([rights, zero], axis=1)  # (N, n_lt, C_in, pad)
        halo_args = (hl, hr)
        halo_specs = [
            pl.BlockSpec((1, 1, C_in, pad), lambda n, l: (n, l, 0, 0)),
            pl.BlockSpec((1, 1, C_in, pad), lambda n, l: (n, l, 0, 0)),
        ]
        scratch = [pltpu.VMEM((C_in, l_tile + 2 * pad), dt)]
    else:
        halo_args = ()
        halo_specs = []
        scratch = []

    in_specs = [
        pl.BlockSpec((1, C_in, l_tile), lambda n, l: (n, 0, l)),     # x tile
        pl.BlockSpec((k, C_out, C_in), lambda n, l: (0, 0, 0)),      # weights (resident)
        pl.BlockSpec((C_out, 1), lambda n, l: (0, 0)),               # bias (resident)
    ] + halo_specs

    out = pl.pallas_call(
        functools.partial(skip_conv1d_kernel, k=k, pad=pad, l_tile=l_tile),
        out_shape=jax.ShapeDtypeStruct((N, C_out, L), x.dtype),
        grid_spec=pltpu.PrefetchScalarGridSpec(
            num_scalar_prefetch=0,
            grid=(N, n_lt),
            in_specs=in_specs,
            out_specs=pl.BlockSpec((1, C_out, l_tile), lambda n, l: (n, 0, l)),
            scratch_shapes=scratch,
        ),
        compiler_params=pltpu.CompilerParams(
            dimension_semantics=("parallel", "parallel"),
            vmem_limit_bytes=32 * 1024 * 1024),
    )(x, wc, b, *halo_args)

    return out                                             # already (N, C_out, L)


def _reference(x_ncl, w_conv, w_skip, bias, *, padding):
    conv = lax.conv_general_dilated(
        x_ncl, w_conv, window_strides=(1,), padding=[(padding, padding)],
        dimension_numbers=("NCH", "OIH", "NCH"))
    conv = conv + bias[None, :, None]
    skip = lax.conv_general_dilated(
        x_ncl, w_skip, window_strides=(1,), padding=[(0, 0)],
        dimension_numbers=("NCH", "OIH", "NCH"))
    return conv + skip


def _make_inputs(key, N, C_in, C_out, L, K):
    kx, kw, ks, kb = jax.random.split(key, 4)
    x = jax.random.normal(kx, (N, C_in, L), dtype=jnp.float32)
    w_conv = jax.random.normal(kw, (C_out, C_in, K), dtype=jnp.float32) * 0.1
    w_skip = jax.random.normal(ks, (C_out, C_in, 1), dtype=jnp.float32) * 0.1
    bias = jax.random.normal(kb, (C_out,), dtype=jnp.float32) * 0.1
    return x, w_conv, w_skip, bias


if __name__ == "__main__":
    key = jax.random.PRNGKey(0)
    k0, k1 = jax.random.split(key, 2)

    # 1) Small deterministic example consistent with the module's forward.
    N, C_in, C_out, L, K = 2, 4, 8, 16, 3
    PAD = (K - 1) // 2
    x, w_conv, w_skip, bias = _make_inputs(k0, N, C_in, C_out, L, K)
    out = skip_conv1d(x, w_conv, w_skip, bias, padding=PAD)
    out = jax.block_until_ready(out)
    ref = _reference(x, w_conv, w_skip, bias, padding=PAD)
    assert out.shape == (N, C_out, L)
    assert jnp.allclose(out, ref, atol=1e-5, rtol=1e-5), "mismatch vs reference (small)"

    # 2) Exercise the L-tiled (halo) path: 4 lane-aligned tiles of 128.
    N2, C_in2, C_out2, L2, K2 = 2, 4, 8, 512, 3
    PAD2 = (K2 - 1) // 2
    x2, w2, s2, b2 = _make_inputs(k1, N2, C_in2, C_out2, L2, K2)
    out2 = skip_conv1d(x2, w2, s2, b2, padding=PAD2, l_tile=128)
    out2 = jax.block_until_ready(out2)
    ref2 = _reference(x2, w2, s2, b2, padding=PAD2)
    assert out2.shape == (N2, C_out2, L2)
    assert jnp.allclose(out2, ref2, atol=1e-5, rtol=1e-5), "mismatch vs reference (tiled)"

    print("KERNEL_OK")
</pallas_src>

<mosaic_0001>
module attributes {stable_mosaic.version = 11 : i64} {
  func.func @skip_conv1d_kernel(%arg0: i32, %arg1: i32, %arg2: memref<1x4x16xf32, #tpu.memory_space<vmem>>, %arg3: memref<3x8x4xf32, #tpu.memory_space<vmem>>, %arg4: memref<8x1xf32, #tpu.memory_space<vmem>>, %arg5: memref<1x1x4x1xf32, #tpu.memory_space<vmem>>, %arg6: memref<1x1x4x1xf32, #tpu.memory_space<vmem>>, %arg7: memref<1x8x16xf32, #tpu.memory_space<vmem>>, %arg8: memref<4x18xf32, #tpu.memory_space<vmem>>) attributes {dimension_semantics = [#tpu.dimension_semantics<parallel>, #tpu.dimension_semantics<parallel>], iteration_bounds = array<i64: 2, 1>, scalar_prefetch = 0 : i64, scratch_operands = 1 : i64, tpu.core_type = #tpu.core_type<tc>, window_params = [{transform_indices = @transform_0, window_bounds = array<i64: 1, 4, 16>}, {pipeline_mode = #tpu.pipeline_mode<synchronous>, transform_indices = @transform_1, window_bounds = array<i64: 3, 8, 4>}, {pipeline_mode = #tpu.pipeline_mode<synchronous>, transform_indices = @transform_2, window_bounds = array<i64: 8, 1>}, {transform_indices = @transform_3, window_bounds = array<i64: 1, 1, 4, 1>}, {transform_indices = @transform_4, window_bounds = array<i64: 1, 1, 4, 1>}, {transform_indices = @transform_5, window_bounds = array<i64: 1, 8, 16>}]} {
    %c1 = arith.constant 1 : index
    %c0 = arith.constant 0 : index
    %c0_0 = arith.constant 0 : index
    %0 = vector.load %arg3[%c1, %c0, %c0_0] : memref<3x8x4xf32, #tpu.memory_space<vmem>>, vector<1x8x4xf32>
    %1 = vector.shape_cast %0 : vector<1x8x4xf32> to vector<8x4xf32>
    %c0_1 = arith.constant 0 : index
    %c0_2 = arith.constant 0 : index
    %c0_3 = arith.constant 0 : index
    %2 = vector.load %arg2[%c0_1, %c0_2, %c0_3] : memref<1x4x16xf32, #tpu.memory_space<vmem>>, vector<1x4x16xf32>
    %3 = vector.shape_cast %2 : vector<1x4x16xf32> to vector<4x16xf32>
    %cst = arith.constant dense<0.000000e+00> : vector<8x16xf32>
    %4 = tpu.matmul %1, %3, %cst {dimension_numbers = #tpu.dot_dimension_numbers<[1], [0], [0], [1], [0, 0, 1, 1], [], []>} : vector<8x4xf32>, vector<4x16xf32>, vector<8x16xf32> -> vector<8x16xf32>
    %c0_4 = arith.constant 0 : index
    %c0_5 = arith.constant 0 : index
    %5 = vector.load %arg4[%c0_4, %c0_5] : memref<8x1xf32, #tpu.memory_space<vmem>>, vector<8x1xf32>
    %6 = vector.broadcast %5 : vector<8x1xf32> to vector<8x16xf32>
    %7 = arith.addf %4, %6 : vector<8x16xf32>
    %c0_6 = arith.constant 0 : index
    %c0_7 = arith.constant 0 : index
    %c0_8 = arith.constant 0 : index
    %8 = vector.load %arg2[%c0_6, %c0_7, %c0_8] : memref<1x4x16xf32, #tpu.memory_space<vmem>>, vector<1x4x16xf32>
    %9 = vector.shape_cast %8 : vector<1x4x16xf32> to vector<4x16xf32>
    %c0_9 = arith.constant 0 : index
    %c1_10 = arith.constant 1 : index
    %10 = vector.load %arg8[%c0_9, %c1_10] : memref<4x18xf32, #tpu.memory_space<vmem>>, vector<4x16xf32>
    tpu.vector_store %arg8[%c0_9, %c1_10], %9 {strides = array<i32>} : memref<4x18xf32, #tpu.memory_space<vmem>>, vector<4x16xf32>,
    %c0_11 = arith.constant 0 : index
    %c0_12 = arith.constant 0 : index
    %c0_13 = arith.constant 0 : index
    %c0_14 = arith.constant 0 : index
    %11 = vector.load %arg5[%c0_11, %c0_12, %c0_13, %c0_14] : memref<1x1x4x1xf32, #tpu.memory_space<vmem>>, vector<1x1x4x1xf32>
    %12 = vector.shape_cast %11 : vector<1x1x4x1xf32> to vector<4x1xf32>
    %c0_15 = arith.constant 0 : index
    %c0_16 = arith.constant 0 : index
    %13 = vector.load %arg8[%c0_15, %c0_16] : memref<4x18xf32, #tpu.memory_space<vmem>>, vector<4x1xf32>
    tpu.vector_store %arg8[%c0_15, %c0_16], %12 {strides = array<i32>} : memref<4x18xf32, #tpu.memory_space<vmem>>, vector<4x1xf32>,
    %c0_17 = arith.constant 0 : index
    %c0_18 = arith.constant 0 : index
    %c0_19 = arith.constant 0 : index
    %c0_20 = arith.constant 0 : index
    %14 = vector.load %arg6[%c0_17, %c0_18, %c0_19, %c0_20] : memref<1x1x4x1xf32, #tpu.memory_space<vmem>>, vector<1x1x4x1xf32>
    %15 = vector.shape_cast %14 : vector<1x1x4x1xf32> to vector<4x1xf32>
    %c0_21 = arith.constant 0 : index
    %c17 = arith.constant 17 : index
    %16 = vector.load %arg8[%c0_21, %c17] : memref<4x18xf32, #tpu.memory_space<vmem>>, vector<4x1xf32>
    tpu.vector_store %arg8[%c0_21, %c17], %15 {strides = array<i32>} : memref<4x18xf32, #tpu.memory_space<vmem>>, vector<4x1xf32>,
    %c0_22 = arith.constant 0 : index
    %c0_23 = arith.constant 0 : index
    %c0_24 = arith.constant 0 : index
    %17 = vector.load %arg3[%c0_22, %c0_23, %c0_24] : memref<3x8x4xf32, #tpu.memory_space<vmem>>, vector<1x8x4xf32>
    %18 = vector.shape_cast %17 : vector<1x8x4xf32> to vector<8x4xf32>
    %c0_25 = arith.constant 0 : index
    %c0_26 = arith.constant 0 : index
    %19 = vector.load %arg8[%c0_25, %c0_26] : memref<4x18xf32, #tpu.memory_space<vmem>>, vector<4x16xf32>
    %cst_27 = arith.constant dense<0.000000e+00> : vector<8x16xf32>
    %20 = tpu.matmul %18, %19, %cst_27 {dimension_numbers = #tpu.dot_dimension_numbers<[1], [0], [0], [1], [0, 0, 1, 1], [], []>} : vector<8x4xf32>, vector<4x16xf32>, vector<8x16xf32> -> vector<8x16xf32>
    %21 = arith.addf %7, %20 : vector<8x16xf32>
    %c2 = arith.constant 2 : index
    %c0_28 = arith.constant 0 : index
    %c0_29 = arith.constant 0 : index
    %22 = vector.load %arg3[%c2, %c0_28, %c0_29] : memref<3x8x4xf32, #tpu.memory_space<vmem>>, vector<1x8x4xf32>
    %23 = vector.shape_cast %22 : vector<1x8x4xf32> to vector<8x4xf32>
    %c0_30 = arith.constant 0 : index
    %c2_31 = arith.constant 2 : index
    %24 = vector.load %arg8[%c0_30, %c2_31] : memref<4x18xf32, #tpu.memory_space<vmem>>, vector<4x16xf32>
    %cst_32 = arith.constant dense<0.000000e+00> : vector<8x16xf32>
    %25 = tpu.matmul %23, %24, %cst_32 {dimension_numbers = #tpu.dot_dimension_numbers<[1], [0], [0], [1], [0, 0, 1, 1], [], []>} : vector<8x4xf32>, vector<4x16xf32>, vector<8x16xf32> -> vector<8x16xf32>
    %26 = arith.addf %21, %25 : vector<8x16xf32>
    %c0_33 = arith.constant 0 : index
    %c0_34 = arith.constant 0 : index
    %c0_35 = arith.constant 0 : index
    %27 = vector.load %arg7[%c0_33, %c0_34, %c0_35] : memref<1x8x16xf32, #tpu.memory_space<vmem>>, vector<1x8x16xf32>
    %28 = vector.shape_cast %27 : vector<1x8x16xf32> to vector<8x16xf32>
    %29 = vector.shape_cast %26 : vector<8x16xf32> to vector<1x8x16xf32>
    tpu.vector_store %arg7[%c0_33, %c0_34, %c0_35], %29 {strides = array<i32>} : memref<1x8x16xf32, #tpu.memory_space<vmem>>, vector<1x8x16xf32>,
    return
  }
  func.func @transform_0(%arg0: i32, %arg1: i32) -> (i32, i32, i32) {
    %c0_i32 = arith.constant 0 : i32
    %c0_i32_0 = arith.constant 0 : i32
    return %arg0, %c0_i32, %arg1 : i32, i32, i32
  }
  func.func @transform_1(%arg0: i32, %arg1: i32) -> (i32, i32, i32) {
    %c0_i32 = arith.constant 0 : i32
    %c0_i32_0 = arith.constant 0 : i32
    %c0_i32_1 = arith.constant 0 : i32
    %c0_i32_2 = arith.constant 0 : i32
    return %c0_i32, %c0_i32_0, %c0_i32_1 : i32, i32, i32
  }
  func.func @transform_2(%arg0: i32, %arg1: i32) -> (i32, i32) {
    %c0_i32 = arith.constant 0 : i32
    %c0_i32_0 = arith.constant 0 : i32
    %c0_i32_1 = arith.constant 0 : i32
    return %c0_i32, %c0_i32_0 : i32, i32
  }
  func.func @transform_3(%arg0: i32, %arg1: i32) -> (i32, i32, i32, i32) {
    %c0_i32 = arith.constant 0 : i32
    %c0_i32_0 = arith.constant 0 : i32
    %c0_i32_1 = arith.constant 0 : i32
    return %arg0, %arg1, %c0_i32, %c0_i32_0 : i32, i32, i32, i32
  }
  func.func @transform_4(%arg0: i32, %arg1: i32) -> (i32, i32, i32, i32) {
    %c0_i32 = arith.constant 0 : i32
    %c0_i32_0 = arith.constant 0 : i32
    %c0_i32_1 = arith.constant 0 : i32
    return %arg0, %arg1, %c0_i32, %c0_i32_0 : i32, i32, i32, i32
  }
  func.func @transform_5(%arg0: i32, %arg1: i32) -> (i32, i32, i32) {
    %c0_i32 = arith.constant 0 : i32
    %c0_i32_0 = arith.constant 0 : i32
    return %arg0, %c0_i32, %arg1 : i32, i32, i32
  }
}

</mosaic_0001>

<bundles_post_ra>
// kernel: tpu_custom_call.1
= control target key start
LH: loop header
LB: loop body
LE: loop exit
PB: predicated region body
PF: predicated region fallthrough
CT: control target
= control target key end

     0   :  { %10 = vsyncpa [#allocation4], 0  ;;  %s1045_s0 = inlined_call_operand.vmem [shape: f32[2,4,16], index: 0, kind: input, shape index: {}]   ;;  %s1046_s1 = inlined_call_operand.vmem [shape: f32[3,8,4], index: 1, kind: input, shape index: {}]   ;;  %s1047_s2 = inlined_call_operand.vmem [shape: f32[8,1], index: 2, kind: input, shape index: {}]   ;;  %s1048_s3 = inlined_call_operand.vmem [shape: f32[2,1,4,1], index: 3, kind: input, shape index: {}]   ;;  %s1049_s4 = inlined_call_operand.vmem [shape: f32[2,1,4,1], index: 4, kind: input, shape index: {}]   ;;  %s1050_s5 = inlined_call_operand.hbm [shape: f32[2,8,16], index: 5, kind: output, shape index: {}]  }
   0x1   :  { %12 = vsyncpa [#allocation4 + $0x1], 0  ;;  %s906_s18 = smov 0   ;;  %s908_s19 = smov 0  }
   0x2   :  { %s910_s20 = smov 0   ;;  %s912_s21 = smov 0  }
   0x3   :  { %s914_s22 = smov 0   ;;  %s916_s23 = smov 0  }
   0x4 LB: > { %s680_s24 = sadd.s32 4294967295, %s867_s23   ;;  %s681_s25 = sadd.s32 4294967294, %s867_s23   ;;  %s867_s23 = sphi %s916_s23, %s18_s23   ;;  %s863_s22 = sphi %s914_s22, %s1057_s22   ;;  %s859_s21 = sphi %s912_s21, %s1056_s21   ;;  %s855_s20 = sphi %s910_s20, %s1055_s20   ;;  %s851_s19 = sphi %s908_s19, %s1054_s19   ;;  %s847_s18 = sphi %s906_s18, %s1053_s18  }
   0x5   : > { %s30_s26 = sadd.s32 1, %s863_s22  ;;  %s165_s27 = sadd.s32 1, %s855_s20 }
   0x6   : > { %p32_p0 = scmp.ge.s32.totalorder %s30_s26, 2  ;;  %p175_p1 = scmp.ne.s32.totalorder %s855_s20, %s851_s19 }
   0x7   : > { %p176_p2 = scmp.eq.s32.totalorder %s680_s24, 1  ;;  %p181_p3 = scmp.ne.s32.totalorder %s851_s19, %s847_s18 }
   0x8   : > { %s1059_s26 = smov (%p32_p0, %s30_s26), 0  ;;  %p182_p5 = scmp.eq.s32.totalorder %s681_s25, 1 }
   0x9   : > { %p946_p4 = por %p176_p2, %p175_p1  ;;  %s160_s29 = ssub.s32 %s863_s22, %s1059_s26 }
   0xa   : > { %p684_p6 = scmp.ge.s32.totalorder %s867_s23, 1  ;;  %p163_p7 = scmp.eq.s32.totalorder %s160_s29, 0 }
   0xb   : > { %p953_p8 = por %p182_p5, %p181_p3  ;;  %p236_p9 = scmp.lt.s32.totalorder %s867_s23, 3 }
   0xc   : > { %s959_s6 = scalar_select %p163_p7, %s855_s20, %s165_s27  }
   0xd   : > { %p237_p10 = pnand %p684_p6, %p236_p9 }
   0xe   : > { %p280_p11 = scmp.lt.s32.totalorder (!%p237_p10), %s859_s21, 1  ;;  %v869_v0 = vmov (!%p237_p10), 0.0   ;;  %s870_s15 = smov (!%p237_p10), 1   ;;  %vm314_vm0 = vcmask (!%p237_p10), 1043456   ;;  %vm871_vm1 = vmmov (!%p237_p10), 0   ;;  %vm310_vm2 = vcmask (!%p237_p10), 31744  }
   0xf   : > { %240 = sbr.rel (%p237_p10) target bundleno = 498 (0x1f2), region = 40  ;;  %712 = vmatprep.subr.mxu0 (!%p237_p10), %v869_v0  ;;  %707 = vmatprep.subr.mxu1 (!%p237_p10), %v869_v0  ;;  %s872_s16 = smov (!%p237_p10), 17   ;;  %v689_v3 = vld [vmem:[%s1046_s1 + $0x8] sm:$0xff] (!%p237_p10)  ;;  %vm391_vm3 = vcmask (!%p237_p10), 134152   ;;  %vm394_vm4 = vcmask (!%p237_p10), 3072   ;;  %vm401_vm5 = vcmask (!%p237_p10), 142472  }
  0x10   : > { %714 = vmatprep.mubr.msk.f32.mxu0 (!%p237_p10), %vm871_vm1, %v869_v0  ;;  %709 = vmatprep.mubr.msk.f32.mxu1 (!%p237_p10), %vm871_vm1, %v869_v0  ;;  %v873_v6 = vmov (!%p237_p10), 0   ;;  %v403_v8 = vld [vmem:[%s1046_s1] sm:$0xff] (!%p237_p10)  ;;  %s874_s9 = smov (!%p237_p10), 126   ;;  %v694_v11 = vld [vmem:[%s1046_s1 + $0x10] sm:$0xff] (!%p237_p10)  ;;  %vm562_vm6 = vcmask (!%p237_p10), 130048  }
  0x11   : > { %787 = vset.pattern.permute.xlu1 (!%p237_p10), %v873_v6  ;;  %788 = vset.pattern.permute.xlu0 (!%p237_p10), %v873_v6  ;;  %v304_v10 = vld [vmem:[%s1047_s2] sm:$0xff] (!%p237_p10) }
  0x16   : > { %s281_s7 = scalar_select %p280_p11, %s859_s21, 1 }
  0x18   : > { %s686_s8 = sshll.u32 %s281_s7, 2 }
  0x19   : > { %s286_s11 = scalar_lea.vmem %s1045_s0, %s686_s8  ;;  %s300_s14 = scalar_lea.vmem %s1049_s4, %s686_s8 }
  0x1a   : > { %v303_v1 = vld [vmem:[%s286_s11] sm:$0xf]  ;;  %s293_s25 = scalar_lea.vmem %s1048_s3, %s686_s8 }
  0x1b   : > { %388 = vrot.lane.b32.xlu0 %v303_v1, %s870_s15  ;;  %v396_v2 = vld [vmem:[%s300_s14] sm:$0xf]  ;;  %708 = vmatpush3.msk.msra.mxu1 %vm314_vm0, %v303_v1  ;;  %s277_s14 = sand.u32 1, %s851_s19  }
  0x1c   : > { %710 = vmatmul.mubr.msk.f32.vlgmr.msra.gmra.mrb[0].mxu1 %vm310_vm2, %v689_v3  ;;  %v393_v4 = vld [vmem:[%s293_s25] sm:$0xf]  ;;  %s685_s15 = sshll.u32 %s277_s14, 3  ;;  %s565_s7 = scalar_lea.sflag [#allocation4], %s277_s14 }
  0x1d   : > { %s279_s17 = scalar_lea.vmem [#allocation3], %s685_s15 }
  0x1e   : > { %s579_s24 = sshll.u32 %s279_s17, 4  ;;  %s1000_s24 = int_to_ptr.vmem [resolvable:$true] %s579_s24 }
  0x1f   : > { %398 = vrot.lane.b32.xlu0 %v396_v2, %s872_s16  ;;  %s698_s16 = sshll.u32 %s859_s21, 7  ;;  %s789_s8 = scalar_lea.vmem %s1000_s24, 128 }
  0x20   : > { %s998_s29 = scalar_lea.hbm %s1050_s5, %s698_s16  ;;  %p790_p12 = scmp.ne.s32.totalorder %s1000_s24, %s789_s8 }
  0x21   : > { %s875_s21 = smov [#allocation3]  }
  0x22   : > { %p791_p13 = pnand %p790_p12, %p946_p4 }
  0x24   : > { %p792_p0 = pneg %p791_p13 }
  0x8d   : > { %v389_v5 = vpop.permute.xlu0 %388 }
  0x8e   : > { %392 = vst.msk [vmem:[#allocation2] sm:$0xf] %vm391_vm3, %v389_v5 }
  0x8f   : > { %395 = vst.msk [vmem:[#allocation2] sm:$0xf] %vm394_vm4, %v393_v4 }
  0x91   : > { %v399_v7 = vpop.permute.xlu0 %398 }
  0x92   : > { %402 = vst.msk [vmem:[#allocation2] sm:$0xf] %vm401_vm5, %v399_v7 }
  0x99   : > { %v404_v9 = vld [vmem:[#allocation2] sm:$0xf] }
  0x9a   : > { %484 = vrot.lane.b32.xlu1 %v404_v9, %s874_s9  ;;  %713 = vmatpush3.msk.msra.mxu0 %vm314_vm0, %v404_v9  ;;  %s793_s9 = sshll.u32 %s875_s21, 4  ;;  %s794_s9 = int_to_ptr.vmem [resolvable:$false] %s793_s9 }
  0x9b   : > { %715 = vmatmul.mubr.msk.f32.vlgmr.msra.gmra.mrb[0].mxu0 %vm310_vm2, %v403_v8  ;;  %717 = vmatprep.subr.mxu0 %v869_v0  ;;  %s795_s10 = scalar_lea.vmem %s794_s9, 256  ;;  %p796_p1 = scmp.lt.s32.totalorder %s1000_s24, %s794_s9 }
  0x9c   : > { %719 = vmatprep.mubr.msk.f32.mxu0 %vm871_vm1, %v869_v0  ;;  %p797_p2 = scmp.lt.s32.totalorder %s795_s10, %s789_s8 }
  0x9e   : > { %307 = vperm.xlu1 %787, %v304_v10   ;;  %p798_p3 = por %p797_p2, %p796_p1 }
  0xa0   : > { %p799_p5 = pnand %p798_p3, %p792_p0 }
  0xef   : > { %v384_v13 = vpop.f32.mrb[0].mxu1 }
  0xf0   : > { %v711_v14 = vpop.f32.mrb[1].mxu1 }
 0x10c   : > { %v485_v12 = vpop.permute.xlu1 %484 }
 0x10d   : > { %718 = vmatpush3.msk.msra.mxu0 %vm314_vm0, %v485_v12 }
 0x10e   : > { %720 = vmatmul.mubr.msk.f32.vlgmr.msra.gmra.mrb[0].mxu0 %vm310_vm2, %v694_v11 }
 0x11d   : > { %v308_v15 = vpop.permute.xlu1 %307 }
 0x11e   : > { %v385_v16 = vadd.f32 %v384_v13, %v308_v15 }
 0x1e1   : > { %v557_v17 = vpop.f32.mrb[0].mxu0 }
 0x1e2   : > { %v723_v18 = vadd.f32 %v557_v17, %v385_v16  ;;  %v721_v19 = vpop.f32.mrb[1].mxu0 }
 0x1e4   : > { %563 = vst.msk [vmem:[%s279_s17] sm:$0xff] %vm562_vm6, %v723_v18 }
 0x1e5   : > { %802 = shalt.err (!%p799_p5)
}
 0x1e6   : > { %s803_s11 = scalar_lea.hbm %s998_s29, 128  ;;  %s807_s14 = scalar_lea.hbm %s1050_s5, 256 }
 0x1e7   : > { %p804_p6 = scmp.ne.s32.totalorder %s998_s29, %s803_s11  ;;  %p808_p10 = scmp.lt.u32.totalorder %s998_s29, %s1050_s5 }
 0x1e8   : > { %p809_p11 = scmp.lt.u32.totalorder %s807_s14, %s803_s11  ;;  %p811_p13 = scmp.lt.u32.totalorder %s803_s11, %s998_s29 }
 0x1e9   : > { %p805_p7 = pnand %p804_p6, %p946_p4 }
 0x1ea   : > { %p810_p12 = por %p809_p11, %p808_p10 }
 0x1eb   : > { %p806_p9 = pneg %p805_p7 }
 0x1ec   : > { %p812_p0 = por %p811_p13, %p810_p12 }
 0x1ee   : > { %p813_p1 = pnand %p812_p0, %p806_p9 }
 0x1f0   : > { %816 = shalt.err (!%p813_p1)
}
 0x1f1   : > { %726 = dma.vmem_to_hbm [thread:$0]  (%p946_p4), %s1000_s24, 128, %s998_s29, %s565_s7  }
 0x1f2 PF: > { %p732_p2 = scmp.ge.s32.totalorder %s867_s23, 2  ;;  %s591_s17 = sand.u32 1, %s847_s18  }
 0x1f3   : > { %s592_s25 = scalar_lea.sflag [#allocation4], %s591_s17 }
 0x1f4   : > { %p729_p3 = pnand %p732_p2, %p953_p8 }
 0x1f6   : > { %842 = dma.done.wait (!%p729_p3), %s592_s25, 128  }
 0x1f7   : > { %844 = vsyncadd (!%p729_p3), %s592_s25, 4294967168  ;;  %s18_s23 = sadd.s32 1, %s867_s23   ;;  %s1053_s18 = smov %s851_s19 }
 0x1f8   : > { %p15_p5 = scmp.ge.s32.totalorder %s18_s23, 4   ;;  %s1054_s19 = smov %s855_s20 }
 0x1f9   : > { %s1055_s20 = smov %s959_s6  ;;  %s1056_s21 = smov %s863_s22 }
 0x1fa   : > { %s1057_s22 = smov %s1059_s26  ;;  %17 = sbr.rel (!%p15_p5) target bundleno = 4 (0x4), region = 83 }
 0x201   :  { %597 = vsyncpa [#allocation4], 1 }
 0x202   :  { %599 = vsyncpa [#allocation4 + $0x1], 1 }

</bundles_post_ra>
